<compile_context>
chip_gen: v5e
topology: v5e:2x2
jax: 0.10.0
libtpu: 0.0.40
codegen_flags: <defaults>
</compile_context>

<pallas_src>
import jax
import jax.numpy as jnp
from jax.experimental import pallas as pl
from jax.experimental.pallas import tpu as pltpu


def _locked_dropout_kernel(x_ref, mask_ref, o_ref):
    # x_ref: (T_BLK, BH); mask_ref: (1, BH) — same mask block every grid step
    # ("locked" over T). Broadcast multiply in the input dtype.
    o_ref[...] = x_ref[...] * mask_ref[...]


def locked_dropout(x, key, dropout=0.5, training=True,
                   *, target_block_bytes=4 * 1024 * 1024):
    """LockedDropout forward. x: (T, B, H). Mask sampled once, broadcast over T."""
    if (not training) or dropout == 0.0:
        return x

    keep_prob = 1.0 - dropout
    T, B, H = x.shape
    BH = B * H

    # Lane-dense layout: flatten features so the last dim is a multiple of 128
    # (or at least as wide as possible) — pure layout plumbing.
    x2 = x.reshape(T, BH)

    # Mask sampled once per call (inverted dropout scaling folded in), cast to
    # the input dtype so the in-kernel multiply stays narrow (bf16-friendly).
    keep = jax.random.bernoulli(key, p=keep_prob, shape=(1, BH))
    mask = (keep.astype(jnp.float32) * (1.0 / keep_prob)).astype(x.dtype)

    # Block sizing from the VMEM budget: input + output are each
    # double-buffered, so ~4x block bytes live in VMEM; ~4 MiB blocks keep us
    # near the HBM roofline while fitting default scoped limits on v5e/v6e/v7x.
    itemsize = jnp.dtype(x.dtype).itemsize
    bytes_per_row = BH * itemsize
    t_blk = max(1, min(T, target_block_bytes // max(1, bytes_per_row)))
    if t_blk >= 8:
        t_blk = (t_blk // 8) * 8  # keep the sublane dim a multiple of 8
    grid = (pl.cdiv(T, t_blk),)

    cost = pl.CostEstimate(
        flops=T * BH,
        transcendentals=0,
        bytes_accessed=2 * T * BH * itemsize + BH * itemsize,
    )

    out2 = pl.pallas_call(
        _locked_dropout_kernel,
        out_shape=jax.ShapeDtypeStruct((T, BH), x.dtype),
        grid=grid,
        in_specs=[
            pl.BlockSpec((t_blk, BH), lambda t: (t, 0)),  # streamed x tiles
            pl.BlockSpec((1, BH), lambda t: (0, 0)),      # one locked mask block
        ],
        out_specs=pl.BlockSpec((t_blk, BH), lambda t: (t, 0)),
        compiler_params=pltpu.CompilerParams(
            dimension_semantics=("parallel",),
        ),
        cost_estimate=cost,
    )(x2, mask)

    return out2.reshape(T, B, H)


if __name__ == "__main__":
    key = jax.random.PRNGKey(0)
    kx, kmask = jax.random.split(key)
    T, B, H = 8, 4, 32
    x = jax.random.normal(kx, (T, B, H), dtype=jnp.float32)

    dropout = 0.5
    keep_prob = 1.0 - dropout

    out = locked_dropout(x, kmask, dropout=dropout, training=True)
    out = jax.block_until_ready(out)

    # Exact reference: same mask construction as the wrapper.
    keep_ref = jax.random.bernoulli(kmask, p=keep_prob, shape=(1, B * H))
    mask_ref = (keep_ref.astype(jnp.float32) / keep_prob).reshape(1, B, H)
    ref = x * mask_ref
    assert out.shape == x.shape and out.dtype == x.dtype
    assert bool(jnp.allclose(out, ref, atol=1e-6))

    # Structural checks: every element is 0 or x/keep_prob, mask locked over T.
    scaled = x / keep_prob
    is_zero = jnp.abs(out) < 1e-6
    is_scaled = jnp.abs(out - scaled) < 1e-4
    assert bool(jnp.all(is_zero | is_scaled))
    zero_pattern = (jnp.abs(out) < 1e-6)
    assert bool(jnp.all(zero_pattern == zero_pattern[0:1]))

    # Identity paths (eval mode / dropout == 0).
    assert bool(jnp.all(locked_dropout(x, kmask, dropout=0.5, training=False) == x))
    assert bool(jnp.all(locked_dropout(x, kmask, dropout=0.0, training=True) == x))

    print("KERNEL_OK")
</pallas_src>

<mosaic_0001>
module attributes {stable_mosaic.version = 11 : i64} {
  func.func @_locked_dropout_kernel(%arg0: i32, %arg1: memref<8x128xf32, #tpu.memory_space<vmem>>, %arg2: memref<1x128xf32, #tpu.memory_space<vmem>>, %arg3: memref<8x128xf32, #tpu.memory_space<vmem>>) attributes {dimension_semantics = [#tpu.dimension_semantics<parallel>], iteration_bounds = array<i64: 1>, scalar_prefetch = 0 : i64, scratch_operands = 0 : i64, tpu.core_type = #tpu.core_type<tc>, window_params = [{transform_indices = @transform_0, window_bounds = array<i64: 8, 128>}, {pipeline_mode = #tpu.pipeline_mode<synchronous>, transform_indices = @transform_1, window_bounds = array<i64: 1, 128>}, {transform_indices = @transform_2, window_bounds = array<i64: 8, 128>}]} {
    %c0 = arith.constant 0 : index
    %c0_0 = arith.constant 0 : index
    %0 = vector.load %arg1[%c0, %c0_0] : memref<8x128xf32, #tpu.memory_space<vmem>>, vector<8x128xf32>
    %c0_1 = arith.constant 0 : index
    %c0_2 = arith.constant 0 : index
    %1 = vector.load %arg2[%c0_1, %c0_2] : memref<1x128xf32, #tpu.memory_space<vmem>>, vector<1x128xf32>
    %2 = vector.broadcast %1 : vector<1x128xf32> to vector<8x128xf32>
    %3 = arith.mulf %0, %2 : vector<8x128xf32>
    %c0_3 = arith.constant 0 : index
    %c0_4 = arith.constant 0 : index
    %4 = vector.load %arg3[%c0_3, %c0_4] : memref<8x128xf32, #tpu.memory_space<vmem>>, vector<8x128xf32>
    tpu.vector_store %arg3[%c0_3, %c0_4], %3 {strides = array<i32>} : memref<8x128xf32, #tpu.memory_space<vmem>>, vector<8x128xf32>,
    return
  }
  func.func @transform_0(%arg0: i32) -> (i32, i32) {
    %c0_i32 = arith.constant 0 : i32
    %c0_i32_0 = arith.constant 0 : i32
    return %arg0, %c0_i32 : i32, i32
  }
  func.func @transform_1(%arg0: i32) -> (i32, i32) {
    %c0_i32 = arith.constant 0 : i32
    %c0_i32_0 = arith.constant 0 : i32
    %c0_i32_1 = arith.constant 0 : i32
    return %c0_i32, %c0_i32_0 : i32, i32
  }
  func.func @transform_2(%arg0: i32) -> (i32, i32) {
    %c0_i32 = arith.constant 0 : i32
    %c0_i32_0 = arith.constant 0 : i32
    return %arg0, %c0_i32 : i32, i32
  }
}

</mosaic_0001>

<bundles_post_ra>
// kernel: tpu_custom_call.1
= control target key start
LH: loop header
LB: loop body
LE: loop exit
PB: predicated region body
PF: predicated region fallthrough
CT: control target
= control target key end

     0   :  { %7 = vsyncpa [#allocation3], 0  ;;  %s174_s0 = inlined_call_operand.hbm [shape: f32[8,128], index: 0, kind: input, shape index: {}]   ;;  %s175_s1 = inlined_call_operand.hbm [shape: f32[1,128], index: 1, kind: input, shape index: {}]   ;;  %s176_s2 = inlined_call_operand.hbm [shape: f32[8,128], index: 2, kind: output, shape index: {}]  }
   0x1   :  { %8 = vsyncpa [#allocation6], 0 }
   0x2   :  { %9 = vsyncpa [#allocation4], 0  ;;  %s15_s11 = sshll.u32 %s174_s0, 4  ;;  %s147_s12 = smov [#allocation2]   ;;  %s16_s11 = int_to_ptr.hbm [resolvable:$true] %s15_s11 }
   0x3   :  { %s17_s13 = sshll.u32 %s147_s12, 4  ;;  %s26_s16 = sshll.u32 %s175_s1, 4  ;;  %s18_s13 = int_to_ptr.vmem [resolvable:$true] %s17_s13  ;;  %s27_s16 = int_to_ptr.hbm [resolvable:$true] %s26_s16 }
   0x4   :  { %20 = dma.hbm_to_vmem [thread:$0]  %s16_s11, 128, %s18_s13, [#allocation3]  }
   0x5   :  { %s148_s17 = smov [#allocation5]  }
   0x6   :  { %s28_s18 = sshll.u32 %s148_s17, 4  ;;  %s29_s18 = int_to_ptr.vmem [resolvable:$true] %s28_s18 }
   0x7   :  { %31 = dma.hbm_to_vmem [thread:$0]  %s27_s16, 16, %s29_s18, [#allocation6]  }
   0x8   :  { %141 = dma.done.wait [#allocation3], 128  }
   0x9   :  { %142 = vsyncadd [#allocation3], 4294967168 }
   0xa   :  { %143 = dma.done.wait [#allocation6], 16  }
   0xb   :  { %144 = vsyncadd [#allocation6], 4294967280  ;;  %s149_s19 = smov [#allocation7]   ;;  %s54_s22 = sshll.u32 %s176_s2, 4  ;;  %v40_v0 = vld [vmem:[#allocation2] sm:$0xff]  ;;  %s55_s22 = int_to_ptr.hbm [resolvable:$true] %s54_s22 }
   0xc   :  { %s52_s0 = sshll.u32 %s149_s19, 4  ;;  %v68_v1 = vld [vmem:[#allocation5] ss:$0 sm:$0xff]  ;;  %s53_s0 = int_to_ptr.vmem [resolvable:$true] %s52_s0 }
   0xd   :  { %v45_v2 = vmul.f32 %v68_v1, %v40_v0 }
   0xf   :  { %46 = vst [vmem:[#allocation7] sm:$0xff] %v45_v2 }
  0x10   :  { %57 = dma.vmem_to_hbm [thread:$0]  %s53_s0, 128, %s55_s22, [#allocation4]  }
  0x11   :  { %145 = dma.done.wait [#allocation4], 128  }
  0x12   :  { %146 = vsyncadd [#allocation4], 4294967168 }
  0x13   :  { %62 = vsyncpa [#allocation3], 1 }
  0x14   :  { %63 = vsyncpa [#allocation6], 1 }
  0x15   :  { %64 = vsyncpa [#allocation4], 1 }

</bundles_post_ra>
